<compile_context>
chip_gen: v5e
topology: v5e:2x2
jax: 0.10.0
libtpu: 0.0.40
codegen_flags: <defaults>
</compile_context>

<pallas_src>
import jax
import jax.numpy as jnp
from jax.experimental import pallas as pl
from jax.experimental.pallas import tpu as pltpu


def _round_up(a, m):
    return (a + m - 1) // m * m


def _vmem_estimate(tm, tk, rank_p, out_p, itemsize, streamed_k):
    """Rough VMEM footprint (bytes) with default double-buffering."""
    x_tiles = 2 * tm * tk * itemsize            # streamed x tiles
    wl_tiles = 2 * tk * rank_p * itemsize       # W_l^T tiles (resident or K-streamed)
    wr_res = 2 * rank_p * out_p * itemsize      # resident W_r^T (still 2-buffered)
    bias_res = 2 * out_p * 4                    # bias row (f32)
    out_tiles = 2 * tm * out_p * itemsize       # streamed output tiles
    h_scratch = (tm * rank_p * 4) if streamed_k else 0   # f32 accumulator
    return x_tiles + wl_tiles + wr_res + bias_res + out_tiles + h_scratch


# ---------------------------------------------------------------------------
# Kernels
# ---------------------------------------------------------------------------
def _low_rank_kernel_single(x_ref, wl_ref, wr_ref, b_ref, o_ref):
    # Single K chunk: whole in_features resident per batch tile.
    # x_ref : (tm, in_p)      wl_ref: (in_p, rank_p)
    # wr_ref: (rank_p, out_p) b_ref : (1, out_p)     o_ref: (tm, out_p)
    h = jnp.dot(x_ref[...], wl_ref[...], preferred_element_type=jnp.float32)
    y = jnp.dot(h.astype(wr_ref.dtype), wr_ref[...],
                preferred_element_type=jnp.float32)
    o_ref[...] = (y + b_ref[...]).astype(o_ref.dtype)


def _low_rank_kernel_streamed(x_ref, wl_ref, wr_ref, b_ref, o_ref, h_acc):
    # K-streamed path with f32 accumulator for h.
    # x_ref : (tm, tk)           -- batch tile, K-chunk of in_features
    # wl_ref: (tk, rank_p)       -- pre-transposed, sv-folded W_l chunk
    # wr_ref: (rank_p, out_p)    -- pre-transposed W_r (resident)
    # b_ref : (1, out_p)         -- bias row (f32)
    # o_ref : (tm, out_p)
    # h_acc : (tm, rank_p) f32   -- accumulator for h across the K axis
    k = pl.program_id(1)

    @pl.when(k == 0)
    def _():
        h_acc[...] = jnp.zeros_like(h_acc)

    h_acc[...] += jnp.dot(x_ref[...], wl_ref[...],
                          preferred_element_type=jnp.float32)

    @pl.when(k == pl.num_programs(1) - 1)
    def _():
        y = jnp.dot(h_acc[...].astype(wr_ref.dtype), wr_ref[...],
                    preferred_element_type=jnp.float32)
        o_ref[...] = (y + b_ref[...]).astype(o_ref.dtype)


# ---------------------------------------------------------------------------
# Wrapper
# ---------------------------------------------------------------------------
def low_rank_linear(x, weight_l, sv, weight_r, bias, *,
                    tm=None, tk=None, vmem_cap_bytes=40 * 1024 * 1024):
    """Fused low-rank linear: (x @ W_l.T * sv) @ W_r.T + bias."""
    B, in_features = x.shape
    rank = weight_l.shape[0]
    out_features = weight_r.shape[0]
    dt = x.dtype
    itemsize = jnp.dtype(dt).itemsize

    # Lane-dense padded dims (multiples of 128 on the last axes).
    rank_p = _round_up(rank, 128)
    out_p = _round_up(out_features, 128)
    in_p = _round_up(in_features, 128)

    # ---- one-time weight layout plumbing (outside the kernel) -------------
    # Pre-transpose and fold sv into W_l's columns (numerically exact).
    wl_scaled = (weight_l.astype(jnp.float32).T
                 * sv.astype(jnp.float32)[None, :]).astype(dt)   # (in, rank)
    wl_t = jnp.zeros((in_p, rank_p), dtype=dt).at[:in_features, :rank].set(wl_scaled)
    wr_t = jnp.zeros((rank_p, out_p), dtype=dt).at[:rank, :out_features].set(
        weight_r.T.astype(dt))
    b2 = jnp.zeros((1, out_p), dtype=jnp.float32)
    if bias is not None:
        b2 = b2.at[0, :out_features].set(bias.astype(jnp.float32))

    # ---- K tiling ----------------------------------------------------------
    if tk is None:
        tk = min(in_p, 512)                      # K-streaming chunk over in_features
    tk = _round_up(tk, 128)
    in_pp = _round_up(in_p, tk)
    if in_pp != in_p:
        wl_t = jnp.pad(wl_t, ((0, in_pp - in_p), (0, 0)))
    n_k = in_pp // tk
    single_shot = (n_k == 1)

    # ---- batch tiling under a VMEM budget ----------------------------------
    if tm is None:
        tm = min(_round_up(B, 8), 512)           # large batch tile, (8,128)-aligned
        while tm > 8 and _vmem_estimate(tm, tk, rank_p, out_p, itemsize,
                                        streamed_k=not single_shot) > vmem_cap_bytes:
            tm = max(8, _round_up(tm // 2, 8))
    B_p = _round_up(B, tm)

    vmem_need = _vmem_estimate(tm, tk, rank_p, out_p, itemsize,
                               streamed_k=not single_shot)
    vmem_limit = int(min(max(vmem_need * 5 // 4 + (1 << 20), 16 << 20), 60 << 20))

    # ---- input padding (ragged batch / unaligned feature dims) -------------
    x_p = x
    if (B_p, in_pp) != (B, in_features):
        x_p = jnp.zeros((B_p, in_pp), dtype=dt).at[:B, :in_features].set(x)

    if single_shot:
        grid = (B_p // tm,)
        out = pl.pallas_call(
            _low_rank_kernel_single,
            out_shape=jax.ShapeDtypeStruct((B_p, out_p), dt),
            grid_spec=pltpu.PrefetchScalarGridSpec(
                num_scalar_prefetch=0,
                grid=grid,
                in_specs=[
                    pl.BlockSpec((tm, in_pp), lambda i: (i, 0)),        # x tile
                    pl.BlockSpec((in_pp, rank_p), lambda i: (0, 0)),    # W_l^T (resident)
                    pl.BlockSpec((rank_p, out_p), lambda i: (0, 0)),    # W_r^T (resident)
                    pl.BlockSpec((1, out_p), lambda i: (0, 0)),         # bias row
                ],
                out_specs=pl.BlockSpec((tm, out_p), lambda i: (i, 0)),
            ),
            compiler_params=pltpu.CompilerParams(
                dimension_semantics=("parallel",),
                vmem_limit_bytes=vmem_limit),
        )(x_p, wl_t, wr_t, b2)
    else:
        grid = (B_p // tm, n_k)
        out = pl.pallas_call(
            _low_rank_kernel_streamed,
            out_shape=jax.ShapeDtypeStruct((B_p, out_p), dt),
            grid_spec=pltpu.PrefetchScalarGridSpec(
                num_scalar_prefetch=0,
                grid=grid,
                in_specs=[
                    pl.BlockSpec((tm, tk), lambda i, k: (i, k)),         # x tile
                    pl.BlockSpec((tk, rank_p), lambda i, k: (k, 0)),     # W_l^T chunk
                    pl.BlockSpec((rank_p, out_p), lambda i, k: (0, 0)),  # W_r^T (resident)
                    pl.BlockSpec((1, out_p), lambda i, k: (0, 0)),       # bias row
                ],
                out_specs=pl.BlockSpec((tm, out_p), lambda i, k: (i, 0)),
                scratch_shapes=[pltpu.VMEM((tm, rank_p), jnp.float32)],
            ),
            compiler_params=pltpu.CompilerParams(
                dimension_semantics=("parallel", "arbitrary"),
                vmem_limit_bytes=vmem_limit),
        )(x_p, wl_t, wr_t, b2)

    # Slice padded rows/columns back off.
    return out[:B, :out_features]


if __name__ == "__main__":
    # Small, deterministic problem with intentionally unaligned dims to
    # exercise the padding paths: batch=6, in=64, rank=32, out=48.
    key = jax.random.PRNGKey(0)
    k_x, k_wl, k_sv, k_wr, k_b = jax.random.split(key, 5)

    B, in_features, rank, out_features = 6, 64, 32, 48

    x = jax.random.normal(k_x, (B, in_features), dtype=jnp.float32)
    weight_l = jax.random.normal(k_wl, (rank, in_features), dtype=jnp.float32) * 0.1
    sv = jax.random.normal(k_sv, (rank,), dtype=jnp.float32)
    weight_r = jax.random.normal(k_wr, (out_features, rank), dtype=jnp.float32) * 0.1
    bias = jax.random.normal(k_b, (out_features,), dtype=jnp.float32)

    out = jax.block_until_ready(low_rank_linear(x, weight_l, sv, weight_r, bias))

    # Pure-JAX reference (same math as the PyTorch forward).
    ref = ((x @ weight_l.T) * sv) @ weight_r.T + bias
    assert out.shape == (B, out_features)
    assert jnp.allclose(out, ref, atol=1e-5, rtol=1e-5), "mismatch vs reference"

    # Also exercise the K-streamed path (in_features > tk) for coverage.
    B2, in2, rank2, out2 = 16, 1280, 32, 96
    k2 = jax.random.split(jax.random.PRNGKey(1), 5)
    x2 = jax.random.normal(k2[0], (B2, in2), dtype=jnp.float32)
    wl2 = jax.random.normal(k2[1], (rank2, in2), dtype=jnp.float32) * 0.05
    sv2 = jax.random.normal(k2[2], (rank2,), dtype=jnp.float32)
    wr2 = jax.random.normal(k2[3], (out2, rank2), dtype=jnp.float32) * 0.05
    b2 = jax.random.normal(k2[4], (out2,), dtype=jnp.float32)
    out2_k = jax.block_until_ready(low_rank_linear(x2, wl2, sv2, wr2, b2, tk=512))
    ref2 = ((x2 @ wl2.T) * sv2) @ wr2.T + b2
    assert jnp.allclose(out2_k, ref2, atol=1e-4, rtol=1e-4), "mismatch (streamed K)"

    print("KERNEL_OK")
</pallas_src>

<mosaic_0001>
module attributes {stable_mosaic.version = 11 : i64} {
  func.func @_low_rank_kernel_single(%arg0: i32, %arg1: memref<8x128xf32, #tpu.memory_space<vmem>>, %arg2: memref<128x128xf32, #tpu.memory_space<vmem>>, %arg3: memref<128x128xf32, #tpu.memory_space<vmem>>, %arg4: memref<1x128xf32, #tpu.memory_space<vmem>>, %arg5: memref<8x128xf32, #tpu.memory_space<vmem>>) attributes {dimension_semantics = [#tpu.dimension_semantics<parallel>], iteration_bounds = array<i64: 1>, scalar_prefetch = 0 : i64, scratch_operands = 0 : i64, tpu.core_type = #tpu.core_type<tc>, window_params = [{transform_indices = @transform_0, window_bounds = array<i64: 8, 128>}, {pipeline_mode = #tpu.pipeline_mode<synchronous>, transform_indices = @transform_1, window_bounds = array<i64: 128, 128>}, {pipeline_mode = #tpu.pipeline_mode<synchronous>, transform_indices = @transform_2, window_bounds = array<i64: 128, 128>}, {pipeline_mode = #tpu.pipeline_mode<synchronous>, transform_indices = @transform_3, window_bounds = array<i64: 1, 128>}, {transform_indices = @transform_4, window_bounds = array<i64: 8, 128>}]} {
    %c0 = arith.constant 0 : index
    %c0_0 = arith.constant 0 : index
    %0 = vector.load %arg1[%c0, %c0_0] : memref<8x128xf32, #tpu.memory_space<vmem>>, vector<8x128xf32>
    %c0_1 = arith.constant 0 : index
    %c0_2 = arith.constant 0 : index
    %1 = vector.load %arg2[%c0_1, %c0_2] : memref<128x128xf32, #tpu.memory_space<vmem>>, vector<128x128xf32>
    %cst = arith.constant dense<0.000000e+00> : vector<8x128xf32>
    %2 = tpu.matmul %0, %1, %cst {dimension_numbers = #tpu.dot_dimension_numbers<[1], [0], [0], [1], [0, 0, 1, 1], [], []>} : vector<8x128xf32>, vector<128x128xf32>, vector<8x128xf32> -> vector<8x128xf32>
    %c0_3 = arith.constant 0 : index
    %c0_4 = arith.constant 0 : index
    %3 = vector.load %arg3[%c0_3, %c0_4] : memref<128x128xf32, #tpu.memory_space<vmem>>, vector<128x128xf32>
    %cst_5 = arith.constant dense<0.000000e+00> : vector<8x128xf32>
    %4 = tpu.matmul %2, %3, %cst_5 {dimension_numbers = #tpu.dot_dimension_numbers<[1], [0], [0], [1], [0, 0, 1, 1], [], []>} : vector<8x128xf32>, vector<128x128xf32>, vector<8x128xf32> -> vector<8x128xf32>
    %c0_6 = arith.constant 0 : index
    %c0_7 = arith.constant 0 : index
    %5 = vector.load %arg4[%c0_6, %c0_7] : memref<1x128xf32, #tpu.memory_space<vmem>>, vector<1x128xf32>
    %6 = vector.broadcast %5 : vector<1x128xf32> to vector<8x128xf32>
    %7 = arith.addf %4, %6 : vector<8x128xf32>
    %c0_8 = arith.constant 0 : index
    %c0_9 = arith.constant 0 : index
    %8 = vector.load %arg5[%c0_8, %c0_9] : memref<8x128xf32, #tpu.memory_space<vmem>>, vector<8x128xf32>
    tpu.vector_store %arg5[%c0_8, %c0_9], %7 {strides = array<i32>} : memref<8x128xf32, #tpu.memory_space<vmem>>, vector<8x128xf32>,
    return
  }
  func.func @transform_0(%arg0: i32) -> (i32, i32) {
    %c0_i32 = arith.constant 0 : i32
    %c0_i32_0 = arith.constant 0 : i32
    return %arg0, %c0_i32 : i32, i32
  }
  func.func @transform_1(%arg0: i32) -> (i32, i32) {
    %c0_i32 = arith.constant 0 : i32
    %c0_i32_0 = arith.constant 0 : i32
    %c0_i32_1 = arith.constant 0 : i32
    return %c0_i32, %c0_i32_0 : i32, i32
  }
  func.func @transform_2(%arg0: i32) -> (i32, i32) {
    %c0_i32 = arith.constant 0 : i32
    %c0_i32_0 = arith.constant 0 : i32
    %c0_i32_1 = arith.constant 0 : i32
    return %c0_i32, %c0_i32_0 : i32, i32
  }
  func.func @transform_3(%arg0: i32) -> (i32, i32) {
    %c0_i32 = arith.constant 0 : i32
    %c0_i32_0 = arith.constant 0 : i32
    %c0_i32_1 = arith.constant 0 : i32
    return %c0_i32, %c0_i32_0 : i32, i32
  }
  func.func @transform_4(%arg0: i32) -> (i32, i32) {
    %c0_i32 = arith.constant 0 : i32
    %c0_i32_0 = arith.constant 0 : i32
    return %arg0, %c0_i32 : i32, i32
  }
}

</mosaic_0001>

<bundles_post_ra>
// kernel: tpu_custom_call.1
= control target key start
LH: loop header
LB: loop body
LE: loop exit
PB: predicated region body
PF: predicated region fallthrough
CT: control target
= control target key end

     0   :  { %9 = vsyncpa [#allocation3], 0  ;;  %s314_s0 = inlined_call_operand.hbm [shape: f32[8,128], index: 0, kind: input, shape index: {}]   ;;  %s315_s1 = inlined_call_operand.hbm [shape: f32[128,128], index: 1, kind: input, shape index: {}]   ;;  %s316_s2 = inlined_call_operand.hbm [shape: f32[128,128], index: 2, kind: input, shape index: {}]   ;;  %s317_s3 = inlined_call_operand.vmem [shape: f32[1,128], index: 3, kind: input, shape index: {}]   ;;  %s318_s4 = inlined_call_operand.hbm [shape: f32[8,128], index: 4, kind: output, shape index: {}]  }
   0x1   :  { %10 = vsyncpa [#allocation6], 0  ;;  %s27_s17 = sshll.u32 %s315_s1, 4  ;;  %s28_s17 = int_to_ptr.hbm [resolvable:$true] %s27_s17 }
   0x2   :  { %11 = vsyncpa [#allocation4], 0  ;;  %s268_s18 = smov [#allocation5]   ;;  %s17_s22 = sshll.u32 %s314_s0, 4  ;;  %s18_s22 = int_to_ptr.hbm [resolvable:$true] %s17_s22 }
   0x3   :  { %s29_s19 = sshll.u32 %s268_s18, 4  ;;  %s269_s23 = smov 128   ;;  %s30_s19 = int_to_ptr.vmem [resolvable:$true] %s29_s19 }
   0x4   :  { %s270_s24 = smov 8   ;;  %s271_s25 = smov [#allocation2]  }
   0x5   :  { %35 = dma.hbm_to_vmem [thread:$0]  %s28_s17, 2048, %s30_s19, [#allocation6], %s269_s23, %s269_s23, %s270_s24  }
   0x6   :  { %s19_s26 = sshll.u32 %s271_s25, 4  ;;  %s40_s29 = sshll.u32 %s316_s2, 4  ;;  %s20_s26 = int_to_ptr.vmem [resolvable:$true] %s19_s26  ;;  %s41_s29 = int_to_ptr.hbm [resolvable:$true] %s40_s29 }
   0x7   :  { %22 = dma.hbm_to_vmem [thread:$0]  %s18_s22, 128, %s20_s26, [#allocation3]  }
   0x8   :  { %s272_s1 = smov [#allocation7]  }
   0x9   :  { %s42_s30 = sshll.u32 %s272_s1, 4  ;;  %s43_s30 = int_to_ptr.vmem [resolvable:$true] %s42_s30 }
   0xa   :  { %48 = dma.hbm_to_vmem [thread:$0]  %s41_s29, 2048, %s43_s30, [#allocation6], %s269_s23, %s269_s23, %s270_s24  }
   0xb   :  { %262 = dma.done.wait [#allocation3], 128  }
   0xc   :  { %263 = vsyncadd [#allocation3], 4294967168 }
   0xd   :  { %264 = dma.done.wait [#allocation6], 4096  }
   0xe   :  { %265 = vsyncadd [#allocation6], 4294963200  ;;  %v79_v0 = vld [vmem:[#allocation5 + $0x78] sm:$0xff]  ;;  %v78_v1 = vld [vmem:[#allocation5 + $0x70] sm:$0xff]  ;;  %s273_s5 = smov [#allocation8]   ;;  %s148_s9 = sshll.u32 %s318_s4, 4  ;;  %s149_s9 = int_to_ptr.hbm [resolvable:$true] %s148_s9 }
   0xf   :  { %80 = vmatpush.msra.mxu0 %v79_v0  ;;  %v77_v2 = vld [vmem:[#allocation5 + $0x68] sm:$0xff]  ;;  %v76_v3 = vld [vmem:[#allocation5 + $0x60] sm:$0xff]  ;;  %v115_v4 = vld [vmem:[#allocation7 + $0x78] sm:$0xff]  ;;  %s146_s6 = sshll.u32 %s273_s5, 4  ;;  %s147_s6 = int_to_ptr.vmem [resolvable:$true] %s146_s6 }
  0x10   :  { %v75_v5 = vld [vmem:[#allocation5 + $0x58] sm:$0xff]  ;;  %120 = vmatpush.msra.mxu1 %v115_v4  ;;  %v114_v6 = vld [vmem:[#allocation7 + $0x70] sm:$0xff]  ;;  %v113_v7 = vld [vmem:[#allocation7 + $0x68] sm:$0xff] }
  0x11   :  { %81 = vmatpush.msra.mxu0 %v78_v1  ;;  %v74_v8 = vld [vmem:[#allocation5 + $0x50] sm:$0xff]  ;;  %v112_v9 = vld [vmem:[#allocation7 + $0x60] sm:$0xff]  ;;  %v73_v10 = vld [vmem:[#allocation5 + $0x48] sm:$0xff] }
  0x12   :  { %121 = vmatpush.msra.mxu1 %v114_v6  ;;  %v111_v11 = vld [vmem:[#allocation7 + $0x58] sm:$0xff]  ;;  %v72_v12 = vld [vmem:[#allocation5 + $0x40] sm:$0xff]  ;;  %v110_v13 = vld [vmem:[#allocation7 + $0x50] sm:$0xff] }
  0x13   :  { %82 = vmatpush.msra.mxu0 %v77_v2  ;;  %v71_v14 = vld [vmem:[#allocation5 + $0x38] sm:$0xff]  ;;  %v109_v15 = vld [vmem:[#allocation7 + $0x48] sm:$0xff]  ;;  %v70_v16 = vld [vmem:[#allocation5 + $0x30] sm:$0xff] }
  0x14   :  { %122 = vmatpush.msra.mxu1 %v113_v7  ;;  %v108_v17 = vld [vmem:[#allocation7 + $0x40] sm:$0xff]  ;;  %v69_v18 = vld [vmem:[#allocation5 + $0x28] sm:$0xff]  ;;  %v107_v19 = vld [vmem:[#allocation7 + $0x38] sm:$0xff] }
  0x15   :  { %83 = vmatpush.msra.mxu0 %v76_v3  ;;  %v68_v20 = vld [vmem:[#allocation5 + $0x20] sm:$0xff]  ;;  %v106_v21 = vld [vmem:[#allocation7 + $0x30] sm:$0xff]  ;;  %v67_v22 = vld [vmem:[#allocation5 + $0x18] sm:$0xff] }
  0x16   :  { %123 = vmatpush.msra.mxu1 %v112_v9  ;;  %v105_v23 = vld [vmem:[#allocation7 + $0x28] sm:$0xff]  ;;  %v66_v24 = vld [vmem:[#allocation5 + $0x10] sm:$0xff]  ;;  %v104_v25 = vld [vmem:[#allocation7 + $0x20] sm:$0xff] }
  0x17   :  { %84 = vmatpush.msra.mxu0 %v75_v5  ;;  %v65_v26 = vld [vmem:[#allocation5 + $0x8] sm:$0xff]  ;;  %v103_v27 = vld [vmem:[#allocation7 + $0x18] sm:$0xff]  ;;  %v64_v28 = vld [vmem:[#allocation5] sm:$0xff] }
  0x18   :  { %124 = vmatpush.msra.mxu1 %v111_v11  ;;  %v63_v29 = vld [vmem:[#allocation2] sm:$0xff]  ;;  %v102_v30 = vld [vmem:[#allocation7 + $0x10] sm:$0xff]  ;;  %v101_v31 = vld [vmem:[#allocation7 + $0x8] sm:$0xff] }
  0x19   :  { %85 = vmatpush.msra.mxu0 %v74_v8  ;;  %v100_v32 = vld [vmem:[#allocation7] sm:$0xff]  ;;  %v165_v34 = vld [vmem:[%s317_s3] ss:$0 sm:$0xff] }
  0x1a   :  { %125 = vmatpush.msra.mxu1 %v110_v13 }
  0x1b   :  { %86 = vmatpush.msra.mxu0 %v73_v10 }
  0x1c   :  { %126 = vmatpush.msra.mxu1 %v109_v15 }
  0x1d   :  { %87 = vmatpush.msra.mxu0 %v72_v12 }
  0x1e   :  { %127 = vmatpush.msra.mxu1 %v108_v17 }
  0x1f   :  { %88 = vmatpush.msra.mxu0 %v71_v14 }
  0x20   :  { %128 = vmatpush.msra.mxu1 %v107_v19 }
  0x21   :  { %89 = vmatpush.msra.mxu0 %v70_v16 }
  0x22   :  { %129 = vmatpush.msra.mxu1 %v106_v21 }
  0x23   :  { %90 = vmatpush.msra.mxu0 %v69_v18 }
  0x24   :  { %130 = vmatpush.msra.mxu1 %v105_v23 }
  0x25   :  { %91 = vmatpush.msra.mxu0 %v68_v20 }
  0x26   :  { %131 = vmatpush.msra.mxu1 %v104_v25 }
  0x27   :  { %92 = vmatpush.msra.mxu0 %v67_v22 }
  0x28   :  { %132 = vmatpush.msra.mxu1 %v103_v27 }
  0x29   :  { %93 = vmatpush.msra.mxu0 %v66_v24 }
  0x2a   :  { %133 = vmatpush.msra.mxu1 %v102_v30 }
  0x2b   :  { %94 = vmatpush.msra.mxu0 %v65_v26 }
  0x2c   :  { %134 = vmatpush.msra.mxu1 %v101_v31 }
  0x2d   :  { %95 = vmatpush.msra.mxu0 %v64_v28 }
  0x2e   :  { %96 = vmatmul.f32.vlgmr.msra.gmra.mxu0 %v63_v29  ;;  %135 = vmatpush.msra.mxu1 %v100_v32 }
  0xab   :  { %v97_v33 = vpop.f32.mrf.mxu0 }
  0xac   :  { %136 = vmatmul.f32.vlgmr.msra.gmra.mxu1 %v97_v33 }
 0x129   :  { %v137_v35 = vpop.f32.mrf.mxu1 }
 0x12a   :  { %v138_v36 = vadd.f32 %v165_v34, %v137_v35 }
 0x12c   :  { %140 = vst [vmem:[#allocation8] sm:$0xff] %v138_v36 }
 0x12d   :  { %151 = dma.vmem_to_hbm [thread:$0]  %s147_s6, 128, %s149_s9, [#allocation4]  }
 0x12e   :  { %266 = dma.done.wait [#allocation4], 128  }
 0x12f   :  { %267 = vsyncadd [#allocation4], 4294967168 }
 0x130   :  { %156 = vsyncpa [#allocation3], 1 }
 0x131   :  { %157 = vsyncpa [#allocation6], 1 }
 0x132   :  { %158 = vsyncpa [#allocation4], 1 }

</bundles_post_ra>
